<compile_context>
chip_gen: v5e
topology: v5e:2x2
jax: 0.10.0
libtpu: 0.0.40
codegen_flags: <defaults>
</compile_context>

<pallas_src>
import jax
import jax.numpy as jnp
from jax.experimental import pallas as pl
from jax.experimental.pallas import tpu as pltpu

# Padded layout constants.
K_PAD = 8      # input features 4 -> 8 (sublane grain), col 4 = constant 1
H_PAD = 128    # hidden 16 -> 128 (lane grain)
O_PAD = 128    # output 3 -> 128 (lane grain)
BIAS_COL = 16  # hidden column that carries the constant 1 (routes b2 thru ReLU)
TB = 256       # batch tile (rows per grid step)


def pingpong_kernel(x_ref, w1_ref, w2_ref, o_ref):
    # x_ref: (TB, K_PAD)   w1_ref: (K_PAD, H_PAD)   w2_ref: (H_PAD, O_PAD)
    # o_ref: (TB, O_PAD)
    x = x_ref[...]
    # fc1 (+b1 folded) -> ReLU.  h[:, BIAS_COL] == 1 for real rows; ReLU(1)=1.
    h = jnp.maximum(
        jnp.dot(x, w1_ref[...], preferred_element_type=jnp.float32), 0.0
    )
    # fc2 (+b2 folded via the carry-1 hidden column).
    o_ref[...] = jnp.dot(
        h, w2_ref[...], preferred_element_type=jnp.float32
    ).astype(o_ref.dtype)


def pack_params(w1, b1, w2, b2):
    """Fold biases into zero-padded, lane-dense weight matrices.

    w1: (4,16) = fc1.weight.T, b1: (16,), w2: (16,3) = fc2.weight.T, b2: (3,)
    """
    w1p = jnp.zeros((K_PAD, H_PAD), jnp.float32)
    w1p = w1p.at[:4, :16].set(w1)
    w1p = w1p.at[4, :16].set(b1)          # driven by the constant-1 x column
    w1p = w1p.at[4, BIAS_COL].set(1.0)    # h[:, BIAS_COL] = 1 -> survives ReLU

    w2p = jnp.zeros((H_PAD, O_PAD), jnp.float32)
    w2p = w2p.at[:16, :3].set(w2)
    w2p = w2p.at[BIAS_COL, :3].set(b2)    # +b2 via the carry-1 column
    return w1p, w2p


def pack_x(x):
    """Pad (B,4) -> (B_pad, K_PAD) with a constant-1 column at index 4."""
    B = x.shape[0]
    b_pad = pl.cdiv(B, TB) * TB
    xp = jnp.zeros((b_pad, K_PAD), jnp.float32)
    xp = xp.at[:B, :4].set(x)
    xp = xp.at[:B, 4].set(1.0)
    return xp


def pingpong_forward(x, w1p, w2p):
    B = x.shape[0]
    xp = pack_x(x)
    b_pad = xp.shape[0]
    nb = b_pad // TB

    out_padded = pl.pallas_call(
        pingpong_kernel,
        out_shape=jax.ShapeDtypeStruct((b_pad, O_PAD), jnp.float32),
        grid=(nb,),
        in_specs=[
            pl.BlockSpec((TB, K_PAD), lambda i: (i, 0)),     # activations: tiled
            pl.BlockSpec((K_PAD, H_PAD), lambda i: (0, 0)),  # W1: VMEM-resident
            pl.BlockSpec((H_PAD, O_PAD), lambda i: (0, 0)),  # W2: VMEM-resident
        ],
        out_specs=pl.BlockSpec((TB, O_PAD), lambda i: (i, 0)),
        compiler_params=pltpu.CompilerParams(
            dimension_semantics=("parallel",),
        ),
    )(xp, w1p, w2p)

    return out_padded[:B, :3]


def init_params(key):
    # Deterministic init mimicking torch.nn.Linear (uniform +/- 1/sqrt(fan_in)).
    k1, k2, k3, k4 = jax.random.split(key, 4)
    bound1 = 1.0 / jnp.sqrt(4.0)
    bound2 = 1.0 / jnp.sqrt(16.0)
    w1 = jax.random.uniform(k1, (4, 16), jnp.float32, -bound1, bound1)  # fc1.weight.T
    b1 = jax.random.uniform(k2, (16,), jnp.float32, -bound1, bound1)    # fc1.bias
    w2 = jax.random.uniform(k3, (16, 3), jnp.float32, -bound2, bound2)  # fc2.weight.T
    b2 = jax.random.uniform(k4, (3,), jnp.float32, -bound2, bound2)     # fc2.bias
    return w1, b1, w2, b2


if __name__ == "__main__":
    key = jax.random.PRNGKey(0)
    pk, xk = jax.random.split(key)
    w1, b1, w2, b2 = init_params(pk)
    w1p, w2p = pack_params(w1, b1, w2, b2)

    # Batch of 8 game states, each with 4 features (paddle y, ball x/y, ball vy).
    x = jax.random.normal(xk, (8, 4), dtype=jnp.float32)

    out = pingpong_forward(x, w1p, w2p)
    out = jax.block_until_ready(out)

    # Reference check in plain JAX (original unfolded formulation).
    ref = jnp.maximum(x @ w1 + b1, 0.0) @ w2 + b2
    assert out.shape == (8, 3)
    assert jnp.allclose(out, ref, atol=1e-5), "mismatch vs reference"

    print("KERNEL_OK")
</pallas_src>

<mosaic_0001>
module attributes {stable_mosaic.version = 11 : i64} {
  func.func @pingpong_kernel(%arg0: i32, %arg1: memref<256x8xf32, #tpu.memory_space<vmem>>, %arg2: memref<8x128xf32, #tpu.memory_space<vmem>>, %arg3: memref<128x128xf32, #tpu.memory_space<vmem>>, %arg4: memref<256x128xf32, #tpu.memory_space<vmem>>) attributes {dimension_semantics = [#tpu.dimension_semantics<parallel>], iteration_bounds = array<i64: 1>, scalar_prefetch = 0 : i64, scratch_operands = 0 : i64, tpu.core_type = #tpu.core_type<tc>, window_params = [{transform_indices = @transform_0, window_bounds = array<i64: 256, 8>}, {pipeline_mode = #tpu.pipeline_mode<synchronous>, transform_indices = @transform_1, window_bounds = array<i64: 8, 128>}, {pipeline_mode = #tpu.pipeline_mode<synchronous>, transform_indices = @transform_2, window_bounds = array<i64: 128, 128>}, {transform_indices = @transform_3, window_bounds = array<i64: 256, 128>}]} {
    %c0 = arith.constant 0 : index
    %c0_0 = arith.constant 0 : index
    %0 = vector.load %arg1[%c0, %c0_0] : memref<256x8xf32, #tpu.memory_space<vmem>>, vector<256x8xf32>
    %c0_1 = arith.constant 0 : index
    %c0_2 = arith.constant 0 : index
    %1 = vector.load %arg2[%c0_1, %c0_2] : memref<8x128xf32, #tpu.memory_space<vmem>>, vector<8x128xf32>
    %cst = arith.constant dense<0.000000e+00> : vector<256x128xf32>
    %2 = tpu.matmul %0, %1, %cst {dimension_numbers = #tpu.dot_dimension_numbers<[1], [0], [0], [1], [0, 0, 1, 1], [], []>} : vector<256x8xf32>, vector<8x128xf32>, vector<256x128xf32> -> vector<256x128xf32>
    %cst_3 = arith.constant 0.000000e+00 : f32
    %3 = vector.broadcast %cst_3 : f32 to vector<256x128xf32>
    %4 = arith.maximumf %2, %3 : vector<256x128xf32>
    %c0_4 = arith.constant 0 : index
    %c0_5 = arith.constant 0 : index
    %5 = vector.load %arg3[%c0_4, %c0_5] : memref<128x128xf32, #tpu.memory_space<vmem>>, vector<128x128xf32>
    %cst_6 = arith.constant dense<0.000000e+00> : vector<256x128xf32>
    %6 = tpu.matmul %4, %5, %cst_6 {dimension_numbers = #tpu.dot_dimension_numbers<[1], [0], [0], [1], [0, 0, 1, 1], [], []>} : vector<256x128xf32>, vector<128x128xf32>, vector<256x128xf32> -> vector<256x128xf32>
    %c0_7 = arith.constant 0 : index
    %c0_8 = arith.constant 0 : index
    %7 = vector.load %arg4[%c0_7, %c0_8] : memref<256x128xf32, #tpu.memory_space<vmem>>, vector<256x128xf32>
    tpu.vector_store %arg4[%c0_7, %c0_8], %6 {strides = array<i32>} : memref<256x128xf32, #tpu.memory_space<vmem>>, vector<256x128xf32>,
    return
  }
  func.func @transform_0(%arg0: i32) -> (i32, i32) {
    %c0_i32 = arith.constant 0 : i32
    %c0_i32_0 = arith.constant 0 : i32
    return %arg0, %c0_i32 : i32, i32
  }
  func.func @transform_1(%arg0: i32) -> (i32, i32) {
    %c0_i32 = arith.constant 0 : i32
    %c0_i32_0 = arith.constant 0 : i32
    %c0_i32_1 = arith.constant 0 : i32
    return %c0_i32, %c0_i32_0 : i32, i32
  }
  func.func @transform_2(%arg0: i32) -> (i32, i32) {
    %c0_i32 = arith.constant 0 : i32
    %c0_i32_0 = arith.constant 0 : i32
    %c0_i32_1 = arith.constant 0 : i32
    return %c0_i32, %c0_i32_0 : i32, i32
  }
  func.func @transform_3(%arg0: i32) -> (i32, i32) {
    %c0_i32 = arith.constant 0 : i32
    %c0_i32_0 = arith.constant 0 : i32
    return %arg0, %c0_i32 : i32, i32
  }
}

</mosaic_0001>

<bundles_post_ra>
// kernel: tpu_custom_call.1
= control target key start
LH: loop header
LB: loop body
LE: loop exit
PB: predicated region body
PF: predicated region fallthrough
CT: control target
= control target key end

     0   :  { %vm48_vm0 = vcmask 64512   ;;  %s768_s0 = inlined_call_operand.vmem [shape: f32[256,8], index: 0, kind: input, shape index: {}]   ;;  %s769_s1 = inlined_call_operand.vmem [shape: f32[8,128], index: 1, kind: input, shape index: {}]   ;;  %s770_s2 = inlined_call_operand.vmem [shape: f32[128,128], index: 2, kind: input, shape index: {}]   ;;  %s771_s3 = inlined_call_operand.hbm [shape: f32[256,128], index: 3, kind: output, shape index: {}]  }
   0x1   :  { %v47_v0 = vld [vmem:[%s769_s1] sm:$0xff] }
   0x2   :  { %v15_v1 = vld [vmem:[%s768_s0] sm:$0xff]  ;;  %160 = vmatpush.msra.mxu0 %v47_v0  ;;  %501 = vmatpush.msra.mxu3 %v47_v0 }
   0x3   :  { %469 = vmatmul.msk.f32.vlgmr.msra.gmra.mxu0 %vm48_vm0, %v15_v1 }
   0x4   :  { %8 = vsyncpa [#allocation3], 0  ;;  %v16_v2 = vld [vmem:[%s768_s0 + $0x8] sm:$0xff]  ;;  %v17_v3 = vld [vmem:[%s768_s0 + $0x10] sm:$0xff]  ;;  %s457_s26 = sshll.u32 %s771_s3, 4  ;;  %s564_s27 = smov 128   ;;  %s458_s26 = int_to_ptr.hbm [resolvable:$true] %s457_s26 }
   0x5   :  { %v18_v4 = vld [vmem:[%s768_s0 + $0x18] sm:$0xff]  ;;  %v19_v5 = vld [vmem:[%s768_s0 + $0x20] sm:$0xff]  ;;  %v20_v6 = vld [vmem:[%s768_s0 + $0x28] sm:$0xff]  ;;  %s565_s28 = smov 8  }
   0x6   :  { %v21_v7 = vld [vmem:[%s768_s0 + $0x30] sm:$0xff]  ;;  %v22_v8 = vld [vmem:[%s768_s0 + $0x38] sm:$0xff]  ;;  %v23_v9 = vld [vmem:[%s768_s0 + $0x40] sm:$0xff] }
   0x7   :  { %v305_v10 = vld [vmem:[%s770_s2 + $0x78] sm:$0xff]  ;;  %v304_v11 = vld [vmem:[%s770_s2 + $0x70] sm:$0xff]  ;;  %v303_v12 = vld [vmem:[%s770_s2 + $0x68] sm:$0xff] }
   0x8   :  { %306 = vmatpush.msra.mxu1 %v305_v10  ;;  %502 = vmatpush.msra.mxu2 %v305_v10  ;;  %v302_v13 = vld [vmem:[%s770_s2 + $0x60] sm:$0xff]  ;;  %v24_v14 = vld [vmem:[%s768_s0 + $0x48] sm:$0xff]  ;;  %v301_v15 = vld [vmem:[%s770_s2 + $0x58] sm:$0xff] }
   0x9   :  { %503 = vmatpush.msrb.mxu3 %v305_v10  ;;  %v300_v16 = vld [vmem:[%s770_s2 + $0x50] sm:$0xff]  ;;  %v299_v17 = vld [vmem:[%s770_s2 + $0x48] sm:$0xff]  ;;  %v298_v18 = vld [vmem:[%s770_s2 + $0x40] sm:$0xff] }
   0xa   :  { %307 = vmatpush.msra.mxu1 %v304_v11  ;;  %504 = vmatpush.msra.mxu2 %v304_v11  ;;  %v25_v19 = vld [vmem:[%s768_s0 + $0x50] sm:$0xff]  ;;  %v297_v20 = vld [vmem:[%s770_s2 + $0x38] sm:$0xff]  ;;  %v295_v23 = vld [vmem:[%s770_s2 + $0x28] sm:$0xff] }
   0xb   :  { %470 = vmatmul.msk.f32.gmra.mxu0 %vm48_vm0, %v16_v2  ;;  %505 = vmatpush.msrb.mxu3 %v304_v11  ;;  %v33_v21 = vld [vmem:[%s768_s0 + $0x90] sm:$0xff]  ;;  %v294_v24 = vld [vmem:[%s770_s2 + $0x20] sm:$0xff]  ;;  %v26_v25 = vld [vmem:[%s768_s0 + $0x58] sm:$0xff] }
   0xc   :  { %308 = vmatpush.msra.mxu1 %v303_v12  ;;  %506 = vmatpush.msra.mxu2 %v303_v12  ;;  %v296_v22 = vld [vmem:[%s770_s2 + $0x30] sm:$0xff]  ;;  %v293_v26 = vld [vmem:[%s770_s2 + $0x18] sm:$0xff]  ;;  %v291_v29 = vld [vmem:[%s770_s2 + $0x8] sm:$0xff] }
   0xd   :  { %507 = vmatpush.msrb.mxu3 %v303_v12  ;;  %v34_v27 = vld [vmem:[%s768_s0 + $0x98] sm:$0xff]  ;;  %v292_v28 = vld [vmem:[%s770_s2 + $0x10] sm:$0xff]  ;;  %v27_v30 = vld [vmem:[%s768_s0 + $0x60] sm:$0xff] }
   0xe   :  { %309 = vmatpush.msra.mxu1 %v302_v13  ;;  %508 = vmatpush.msra.mxu2 %v302_v13  ;;  %v290_v31 = vld [vmem:[%s770_s2] sm:$0xff]  ;;  %v28_v33 = vld [vmem:[%s768_s0 + $0x68] sm:$0xff]  ;;  %v29_v35 = vld [vmem:[%s768_s0 + $0x70] sm:$0xff] }
   0xf   :  { %509 = vmatpush.msrb.mxu3 %v302_v13  ;;  %v35_v32 = vld [vmem:[%s768_s0 + $0xa0] sm:$0xff]  ;;  %v36_v34 = vld [vmem:[%s768_s0 + $0xa8] sm:$0xff]  ;;  %v37_v36 = vld [vmem:[%s768_s0 + $0xb0] sm:$0xff] }
  0x10   :  { %310 = vmatpush.msra.mxu1 %v301_v15  ;;  %510 = vmatpush.msra.mxu2 %v301_v15  ;;  %v30_v37 = vld [vmem:[%s768_s0 + $0x78] sm:$0xff]  ;;  %v31_v40 = vld [vmem:[%s768_s0 + $0x80] sm:$0xff]  ;;  %v32_v44 = vld [vmem:[%s768_s0 + $0x88] sm:$0xff] }
  0x11   :  { %511 = vmatpush.msrb.mxu3 %v301_v15  ;;  %v38_v38 = vld [vmem:[%s768_s0 + $0xb8] sm:$0xff]  ;;  %v39_v42 = vld [vmem:[%s768_s0 + $0xc0] sm:$0xff]  ;;  %v40_v46 = vld [vmem:[%s768_s0 + $0xc8] sm:$0xff] }
  0x12   :  { %311 = vmatpush.msra.mxu1 %v300_v16  ;;  %512 = vmatpush.msra.mxu2 %v300_v16  ;;  %v41_v49 = vld [vmem:[%s768_s0 + $0xd0] sm:$0xff]  ;;  %v42_v52 = vld [vmem:[%s768_s0 + $0xd8] sm:$0xff]  ;;  %v43_v55 = vld [vmem:[%s768_s0 + $0xe0] sm:$0xff] }
  0x13   :  { %471 = vmatmul.msk.f32.gmra.mxu0 %vm48_vm0, %v17_v3  ;;  %513 = vmatpush.msrb.mxu3 %v300_v16  ;;  %v44_v58 = vld [vmem:[%s768_s0 + $0xe8] sm:$0xff]  ;;  %v45_v61 = vld [vmem:[%s768_s0 + $0xf0] sm:$0xff]  ;;  %v46_v0 = vld [vmem:[%s768_s0 + $0xf8] sm:$0xff]  ;;  %s563_s0 = smov [#allocation2]  }
  0x14   :  { %312 = vmatpush.msra.mxu1 %v299_v17  ;;  %514 = vmatpush.msra.mxu2 %v299_v17  ;;  %s455_s23 = sshll.u32 %s563_s0, 4  ;;  %s456_s23 = int_to_ptr.vmem [resolvable:$true] %s455_s23 }
  0x15   :  { %515 = vmatpush.msrb.mxu3 %v299_v17 }
  0x16   :  { %313 = vmatpush.msra.mxu1 %v298_v18  ;;  %516 = vmatpush.msra.mxu2 %v298_v18 }
  0x17   :  { %517 = vmatpush.msrb.mxu3 %v298_v18 }
  0x18   :  { %314 = vmatpush.msra.mxu1 %v297_v20  ;;  %487 = vmatmul.msk.f32.vlgmr.msra.gmra.mxu3 %vm48_vm0, %v33_v21 }
  0x19   :  { %518 = vmatpush.msra.mxu2 %v297_v20  ;;  %519 = vmatpush.msrb.mxu3 %v297_v20 }
  0x1a   :  { %315 = vmatpush.msra.mxu1 %v296_v22 }
  0x1b   :  { %472 = vmatmul.msk.f32.gmra.mxu0 %vm48_vm0, %v18_v4  ;;  %520 = vmatpush.msra.mxu2 %v296_v22 }
  0x1c   :  { %521 = vmatpush.msrb.mxu3 %v296_v22  ;;  %316 = vmatpush.msra.mxu1 %v295_v23 }
  0x1d   :  { %522 = vmatpush.msra.mxu2 %v295_v23 }
  0x1e   :  { %523 = vmatpush.msrb.mxu3 %v295_v23  ;;  %317 = vmatpush.msra.mxu1 %v294_v24 }
  0x1f   :  { %524 = vmatpush.msra.mxu2 %v294_v24 }
  0x20   :  { %318 = vmatpush.msra.mxu1 %v293_v26  ;;  %488 = vmatmul.msk.f32.gmra.mxu3 %vm48_vm0, %v34_v27 }
  0x21   :  { %526 = vmatpush.msra.mxu2 %v293_v26  ;;  %525 = vmatpush.msrb.mxu3 %v294_v24 }
  0x22   :  { %319 = vmatpush.msra.mxu1 %v292_v28 }
  0x23   :  { %473 = vmatmul.msk.f32.gmra.mxu0 %vm48_vm0, %v19_v5  ;;  %528 = vmatpush.msra.mxu2 %v292_v28 }
  0x24   :  { %527 = vmatpush.msrb.mxu3 %v293_v26  ;;  %320 = vmatpush.msra.mxu1 %v291_v29 }
  0x25   :  { %530 = vmatpush.msra.mxu2 %v291_v29 }
  0x26   :  { %529 = vmatpush.msrb.mxu3 %v292_v28  ;;  %321 = vmatpush.msra.mxu1 %v290_v31 }
  0x27   :  { %532 = vmatpush.msra.mxu2 %v290_v31 }
  0x28   :  { %489 = vmatmul.msk.f32.gmra.mxu3 %vm48_vm0, %v35_v32 }
  0x29   :  { %531 = vmatpush.msrb.mxu3 %v291_v29 }
  0x2b   :  { %474 = vmatmul.msk.f32.gmra.mxu0 %vm48_vm0, %v20_v6  ;;  %533 = vmatpush.msrb.mxu3 %v290_v31 }
  0x30   :  { %490 = vmatmul.msk.f32.gmra.mxu3 %vm48_vm0, %v36_v34 }
  0x33   :  { %475 = vmatmul.msk.f32.gmra.mxu0 %vm48_vm0, %v21_v7 }
  0x38   :  { %491 = vmatmul.msk.f32.gmra.mxu3 %vm48_vm0, %v37_v36 }
  0x3b   :  { %476 = vmatmul.msk.f32.gmra.mxu0 %vm48_vm0, %v22_v8 }
  0x40   :  { %492 = vmatmul.msk.f32.gmra.mxu3 %vm48_vm0, %v38_v38 }
  0x43   :  { %477 = vmatmul.msk.f32.gmra.mxu0 %vm48_vm0, %v23_v9 }
  0x48   :  { %493 = vmatmul.msk.f32.gmra.mxu3 %vm48_vm0, %v39_v42 }
  0x4b   :  { %478 = vmatmul.msk.f32.gmra.mxu0 %vm48_vm0, %v24_v14 }
  0x50   :  { %494 = vmatmul.msk.f32.gmra.mxu3 %vm48_vm0, %v40_v46 }
  0x53   :  { %479 = vmatmul.msk.f32.gmra.mxu0 %vm48_vm0, %v25_v19 }
  0x58   :  { %495 = vmatmul.msk.f32.gmra.mxu3 %vm48_vm0, %v41_v49 }
  0x5b   :  { %480 = vmatmul.msk.f32.gmra.mxu0 %vm48_vm0, %v26_v25 }
  0x60   :  { %496 = vmatmul.msk.f32.gmra.mxu3 %vm48_vm0, %v42_v52 }
  0x63   :  { %481 = vmatmul.msk.f32.gmra.mxu0 %vm48_vm0, %v27_v30 }
  0x68   :  { %497 = vmatmul.msk.f32.gmra.mxu3 %vm48_vm0, %v43_v55 }
  0x6b   :  { %482 = vmatmul.msk.f32.gmra.mxu0 %vm48_vm0, %v28_v33 }
  0x70   :  { %498 = vmatmul.msk.f32.gmra.mxu3 %vm48_vm0, %v44_v58 }
  0x73   :  { %483 = vmatmul.msk.f32.gmra.mxu0 %vm48_vm0, %v29_v35 }
  0x78   :  { %499 = vmatmul.msk.f32.gmra.mxu3 %vm48_vm0, %v45_v61 }
  0x7b   :  { %484 = vmatmul.msk.f32.gmra.mxu0 %vm48_vm0, %v30_v37 }
  0x80   :  { %v162_v39 = vpop.f32.mrf.mxu0  ;;  %500 = vmatmul.msk.f32.gmra.mxu3 %vm48_vm0, %v46_v0 }
  0x81   :  { %v258_v41 = vmax.f32 %v162_v39, 0.0 }
  0x83   :  { %485 = vmatmul.msk.f32.gmra.mxu0 %vm48_vm0, %v31_v40  ;;  %322 = vmatmul.f32.vlgmr.msra.gmra.mxu1 %v258_v41 }
  0x88   :  { %v165_v43 = vpop.f32.mrf.mxu0 }
  0x89   :  { %v259_v45 = vmax.f32 %v165_v43, 0.0 }
  0x8b   :  { %486 = vmatmul.msk.f32.gmra.mxu0 %vm48_vm0, %v32_v44  ;;  %325 = vmatmul.f32.gmra.mxu1 %v259_v45 }
  0x90   :  { %v168_v47 = vpop.f32.mrf.mxu0 }
  0x91   :  { %v260_v48 = vmax.f32 %v168_v47, 0.0 }
  0x93   :  { %328 = vmatmul.f32.gmra.mxu1 %v260_v48 }
  0x98   :  { %v171_v50 = vpop.f32.mrf.mxu0 }
  0x99   :  { %v261_v51 = vmax.f32 %v171_v50, 0.0 }
  0x9b   :  { %331 = vmatmul.f32.gmra.mxu1 %v261_v51  ;;  %v216_v8 = vpop.f32.mrf.mxu3 }
  0x9c   :  { %v276_v31 = vmax.f32 %v216_v8, 0.0 }
  0xa0   :  { %v174_v53 = vpop.f32.mrf.mxu0 }
  0xa1   :  { %v262_v54 = vmax.f32 %v174_v53, 0.0 }
  0xa3   :  { %334 = vmatmul.f32.gmra.mxu1 %v262_v54  ;;  %v219_v11 = vpop.f32.mrf.mxu3 }
  0xa4   :  { %v277_v34 = vmax.f32 %v219_v11, 0.0 }
  0xa8   :  { %v177_v56 = vpop.f32.mrf.mxu0 }
  0xa9   :  { %v263_v57 = vmax.f32 %v177_v56, 0.0 }
  0xab   :  { %337 = vmatmul.f32.gmra.mxu1 %v263_v57  ;;  %v222_v14 = vpop.f32.mrf.mxu3 }
  0xac   :  { %v278_v37 = vmax.f32 %v222_v14, 0.0 }
  0xb0   :  { %v180_v59 = vpop.f32.mrf.mxu0 }
  0xb1   :  { %v264_v60 = vmax.f32 %v180_v59, 0.0 }
  0xb3   :  { %340 = vmatmul.f32.gmra.mxu1 %v264_v60  ;;  %v225_v17 = vpop.f32.mrf.mxu3 }
  0xb4   :  { %v279_v40 = vmax.f32 %v225_v17, 0.0 }
  0xb8   :  { %v183_v62 = vpop.f32.mrf.mxu0 }
  0xb9   :  { %v265_v63 = vmax.f32 %v183_v62, 0.0 }
  0xbb   :  { %343 = vmatmul.f32.gmra.mxu1 %v265_v63  ;;  %v228_v20 = vpop.f32.mrf.mxu3 }
  0xbc   :  { %v280_v43 = vmax.f32 %v228_v20, 0.0 }
  0xc0   :  { %v186_v1 = vpop.f32.mrf.mxu0 }
  0xc1   :  { %v266_v2 = vmax.f32 %v186_v1, 0.0 }
  0xc3   :  { %346 = vmatmul.f32.gmra.mxu1 %v266_v2  ;;  %v231_v25 = vpop.f32.mrf.mxu3 }
  0xc4   :  { %v281_v47 = vmax.f32 %v231_v25, 0.0 }
  0xc8   :  { %v189_v3 = vpop.f32.mrf.mxu0 }
  0xc9   :  { %v267_v4 = vmax.f32 %v189_v3, 0.0 }
  0xcb   :  { %349 = vmatmul.f32.gmra.mxu1 %v267_v4  ;;  %v234_v29 = vpop.f32.mrf.mxu3 }
  0xcc   :  { %v282_v51 = vmax.f32 %v234_v29, 0.0 }
  0xd0   :  { %v192_v5 = vpop.f32.mrf.mxu0 }
  0xd1   :  { %v268_v6 = vmax.f32 %v192_v5, 0.0 }
  0xd3   :  { %352 = vmatmul.f32.gmra.mxu1 %v268_v6  ;;  %v237_v32 = vpop.f32.mrf.mxu3 }
  0xd4   :  { %v283_v55 = vmax.f32 %v237_v32, 0.0 }
  0xd8   :  { %v195_v7 = vpop.f32.mrf.mxu0 }
  0xd9   :  { %v269_v9 = vmax.f32 %v195_v7, 0.0 }
  0xdb   :  { %355 = vmatmul.f32.gmra.mxu1 %v269_v9  ;;  %v240_v35 = vpop.f32.mrf.mxu3 }
  0xdc   :  { %v284_v57 = vmax.f32 %v240_v35, 0.0 }
  0xe0   :  { %v198_v10 = vpop.f32.mrf.mxu0 }
  0xe1   :  { %v270_v12 = vmax.f32 %v198_v10, 0.0 }
  0xe3   :  { %358 = vmatmul.f32.gmra.mxu1 %v270_v12  ;;  %v243_v38 = vpop.f32.mrf.mxu3 }
  0xe4   :  { %v285_v59 = vmax.f32 %v243_v38, 0.0 }
  0xe8   :  { %v201_v13 = vpop.f32.mrf.mxu0 }
  0xe9   :  { %v271_v15 = vmax.f32 %v201_v13, 0.0 }
  0xeb   :  { %361 = vmatmul.f32.gmra.mxu1 %v271_v15  ;;  %v246_v41 = vpop.f32.mrf.mxu3 }
  0xec   :  { %v286_v61 = vmax.f32 %v246_v41, 0.0 }
  0xf0   :  { %v204_v16 = vpop.f32.mrf.mxu0 }
  0xf1   :  { %v272_v18 = vmax.f32 %v204_v16, 0.0 }
  0xf3   :  { %364 = vmatmul.f32.vlgmr.msra.gmra.mxu2 %v272_v18  ;;  %v249_v44 = vpop.f32.mrf.mxu3 }
  0xf4   :  { %v287_v45 = vmax.f32 %v249_v44, 0.0 }
  0xf6   :  { %409 = vmatmul.f32.vlgmr.msrb.gmra.mxu3 %v287_v45 }
  0xf8   :  { %v207_v19 = vpop.f32.mrf.mxu0 }
  0xf9   :  { %v273_v21 = vmax.f32 %v207_v19, 0.0 }
  0xfb   :  { %367 = vmatmul.f32.gmra.mxu2 %v273_v21  ;;  %v252_v48 = vpop.f32.mrf.mxu3 }
  0xfc   :  { %v288_v49 = vmax.f32 %v252_v48, 0.0 }
  0xfe   :  { %412 = vmatmul.f32.gmra.mxu3 %v288_v49 }
 0x100   :  { %v210_v22 = vpop.f32.mrf.mxu0  ;;  %v323_v23 = vpop.f32.mrf.mxu1 }
 0x101   :  { %v274_v24 = vmax.f32 %v210_v22, 0.0  ;;  %419 = vst [vmem:[#allocation2] sm:$0xff] %v323_v23 }
 0x103   :  { %370 = vmatmul.f32.gmra.mxu2 %v274_v24  ;;  %v255_v52 = vpop.f32.mrf.mxu3 }
 0x104   :  { %v289_v53 = vmax.f32 %v255_v52, 0.0 }
 0x106   :  { %415 = vmatmul.f32.gmra.mxu3 %v289_v53 }
 0x108   :  { %v213_v26 = vpop.f32.mrf.mxu0  ;;  %v326_v27 = vpop.f32.mrf.mxu1 }
 0x109   :  { %v275_v28 = vmax.f32 %v213_v26, 0.0  ;;  %420 = vst [vmem:[#allocation2 + $0x8] sm:$0xff] %v326_v27 }
 0x10b   :  { %373 = vmatmul.f32.gmra.mxu2 %v275_v28 }
 0x110   :  { %v329_v30 = vpop.f32.mrf.mxu1 }
 0x111   :  { %421 = vst [vmem:[#allocation2 + $0x10] sm:$0xff] %v329_v30 }
 0x113   :  { %376 = vmatmul.f32.gmra.mxu2 %v276_v31 }
 0x118   :  { %v332_v33 = vpop.f32.mrf.mxu1 }
 0x119   :  { %422 = vst [vmem:[#allocation2 + $0x18] sm:$0xff] %v332_v33 }
 0x11b   :  { %379 = vmatmul.f32.gmra.mxu2 %v277_v34 }
 0x120   :  { %v335_v36 = vpop.f32.mrf.mxu1 }
 0x121   :  { %423 = vst [vmem:[#allocation2 + $0x20] sm:$0xff] %v335_v36 }
 0x123   :  { %382 = vmatmul.f32.gmra.mxu2 %v278_v37 }
 0x128   :  { %v338_v39 = vpop.f32.mrf.mxu1 }
 0x129   :  { %424 = vst [vmem:[#allocation2 + $0x28] sm:$0xff] %v338_v39 }
 0x12b   :  { %385 = vmatmul.f32.gmra.mxu2 %v279_v40 }
 0x130   :  { %v341_v42 = vpop.f32.mrf.mxu1 }
 0x131   :  { %425 = vst [vmem:[#allocation2 + $0x30] sm:$0xff] %v341_v42 }
 0x133   :  { %388 = vmatmul.f32.gmra.mxu2 %v280_v43 }
 0x138   :  { %v344_v46 = vpop.f32.mrf.mxu1 }
 0x139   :  { %426 = vst [vmem:[#allocation2 + $0x38] sm:$0xff] %v344_v46 }
 0x13b   :  { %391 = vmatmul.f32.gmra.mxu2 %v281_v47 }
 0x140   :  { %v347_v50 = vpop.f32.mrf.mxu1 }
 0x141   :  { %427 = vst [vmem:[#allocation2 + $0x40] sm:$0xff] %v347_v50 }
 0x143   :  { %394 = vmatmul.f32.gmra.mxu2 %v282_v51 }
 0x148   :  { %v350_v54 = vpop.f32.mrf.mxu1 }
 0x149   :  { %428 = vst [vmem:[#allocation2 + $0x48] sm:$0xff] %v350_v54 }
 0x14b   :  { %397 = vmatmul.f32.gmra.mxu2 %v283_v55 }
 0x150   :  { %v353_v56 = vpop.f32.mrf.mxu1 }
 0x151   :  { %429 = vst [vmem:[#allocation2 + $0x50] sm:$0xff] %v353_v56 }
 0x153   :  { %400 = vmatmul.f32.gmra.mxu2 %v284_v57 }
 0x158   :  { %v356_v58 = vpop.f32.mrf.mxu1 }
 0x159   :  { %430 = vst [vmem:[#allocation2 + $0x58] sm:$0xff] %v356_v58 }
 0x15b   :  { %403 = vmatmul.f32.gmra.mxu2 %v285_v59 }
 0x160   :  { %v359_v60 = vpop.f32.mrf.mxu1 }
 0x161   :  { %431 = vst [vmem:[#allocation2 + $0x60] sm:$0xff] %v359_v60 }
 0x163   :  { %406 = vmatmul.f32.gmra.mxu2 %v286_v61 }
 0x168   :  { %v362_v62 = vpop.f32.mrf.mxu1 }
 0x169   :  { %432 = vst [vmem:[#allocation2 + $0x68] sm:$0xff] %v362_v62 }
 0x176   :  { %v365_v63 = vpop.f32.mrf.mxu2 }
 0x177   :  { %433 = vst [vmem:[#allocation2 + $0x70] sm:$0xff] %v365_v63 }
 0x179   :  { %v410_v8 = vpop.f32.mrf.mxu3 }
 0x17a   :  { %448 = vst [vmem:[#allocation2 + $0xe8] sm:$0xff] %v410_v8 }
 0x17e   :  { %v368_v0 = vpop.f32.mrf.mxu2 }
 0x17f   :  { %434 = vst [vmem:[#allocation2 + $0x78] sm:$0xff] %v368_v0 }
 0x181   :  { %v413_v10 = vpop.f32.mrf.mxu3 }
 0x182   :  { %449 = vst [vmem:[#allocation2 + $0xf0] sm:$0xff] %v413_v10 }
 0x186   :  { %v371_v1 = vpop.f32.mrf.mxu2 }
 0x187   :  { %435 = vst [vmem:[#allocation2 + $0x80] sm:$0xff] %v371_v1 }
 0x189   :  { %v416_v12 = vpop.f32.mrf.mxu3 }
 0x18a   :  { %450 = vst [vmem:[#allocation2 + $0xf8] sm:$0xff] %v416_v12 }
 0x18e   :  { %v374_v2 = vpop.f32.mrf.mxu2 }
 0x18f   :  { %436 = vst [vmem:[#allocation2 + $0x88] sm:$0xff] %v374_v2 }
 0x196   :  { %v377_v3 = vpop.f32.mrf.mxu2 }
 0x197   :  { %437 = vst [vmem:[#allocation2 + $0x90] sm:$0xff] %v377_v3 }
 0x19e   :  { %v380_v4 = vpop.f32.mrf.mxu2 }
 0x19f   :  { %438 = vst [vmem:[#allocation2 + $0x98] sm:$0xff] %v380_v4 }
 0x1a6   :  { %v383_v5 = vpop.f32.mrf.mxu2 }
 0x1a7   :  { %439 = vst [vmem:[#allocation2 + $0xa0] sm:$0xff] %v383_v5 }
 0x1ae   :  { %v386_v6 = vpop.f32.mrf.mxu2 }
 0x1af   :  { %440 = vst [vmem:[#allocation2 + $0xa8] sm:$0xff] %v386_v6 }
 0x1b6   :  { %v389_v7 = vpop.f32.mrf.mxu2 }
 0x1b7   :  { %441 = vst [vmem:[#allocation2 + $0xb0] sm:$0xff] %v389_v7 }
 0x1be   :  { %v392_v9 = vpop.f32.mrf.mxu2 }
 0x1bf   :  { %442 = vst [vmem:[#allocation2 + $0xb8] sm:$0xff] %v392_v9 }
 0x1c6   :  { %v395_v11 = vpop.f32.mrf.mxu2 }
 0x1c7   :  { %443 = vst [vmem:[#allocation2 + $0xc0] sm:$0xff] %v395_v11 }
 0x1ce   :  { %v398_v13 = vpop.f32.mrf.mxu2 }
 0x1cf   :  { %444 = vst [vmem:[#allocation2 + $0xc8] sm:$0xff] %v398_v13 }
 0x1d6   :  { %v401_v14 = vpop.f32.mrf.mxu2 }
 0x1d7   :  { %445 = vst [vmem:[#allocation2 + $0xd0] sm:$0xff] %v401_v14 }
 0x1de   :  { %v404_v15 = vpop.f32.mrf.mxu2 }
 0x1df   :  { %446 = vst [vmem:[#allocation2 + $0xd8] sm:$0xff] %v404_v15 }
 0x1e6   :  { %v407_v16 = vpop.f32.mrf.mxu2 }
 0x1e7   :  { %447 = vst [vmem:[#allocation2 + $0xe0] sm:$0xff] %v407_v16 }
 0x1e8   :  { %463 = dma.vmem_to_hbm [thread:$0]  %s456_s23, 4096, %s458_s26, [#allocation3], %s564_s27, %s564_s27, %s565_s28  }
 0x1e9   :  { %561 = dma.done.wait [#allocation3], 4096  }
 0x1ea   :  { %562 = vsyncadd [#allocation3], 4294963200 }
 0x1eb   :  { %468 = vsyncpa [#allocation3], 1 }

</bundles_post_ra>
